<compile_context>
chip_gen: v6e
topology: v6e:2x2x1
jax: 0.10.0
libtpu: 0.0.40
codegen_flags: <defaults>
</compile_context>

<pallas_src>
import jax
import jax.numpy as jnp
from jax.experimental import pallas as pl
from jax.experimental.pallas import tpu as pltpu

# ----- few-shot / data constants (small shapes, consistent with the module) ----
K_WAY = 5
K_SHOT = 5
FREQ_BINS = 16                          # small mel-bin count for the synthetic spec
SLICE_LENGTH = 313                      # hard-coded in FewShotTemplate.test_loop
SLICE_START_LIST = (0, 156, 313, 469, 598)
NUM_SLICES = len(SLICE_START_LIST)
CLIP_LENGTH = SLICE_START_LIST[-1] + SLICE_LENGTH     # 911 frames per clip
FEAT_DIM = FREQ_BINS * SLICE_LENGTH     # D = F * T_slice = 5008

K_PAD = 128                             # lane-dense output width (real k_way cols sliced out)
D_PAD = 5120                            # FEAT_DIM rounded up to a multiple of 128
TILE_S = 8                              # row tile: full sublanes, parallel over grid


def _round_up(n, m):
    return ((n + m - 1) // m) * m


# ------------------------------- Pallas kernel ---------------------------------
def _logits_kernel(x_ref, w_ref, b_ref, o_ref):
    # o = x @ w + b   (bf16 operands on the MXU, f32 accumulation, f32 bias add).
    o_ref[...] = (
        jnp.dot(x_ref[...], w_ref[...], preferred_element_type=jnp.float32)
        + b_ref[...]
    )


def pallas_linear_logits(x_bf16, w_bf16, b_f32):
    """x: [S_pad, D_PAD] bf16 (S_pad % TILE_S == 0), w: [D_PAD, K_PAD] bf16,
    b: [1, K_PAD] f32 -> [S_pad, K_PAD] f32 logits."""
    S_pad, D = x_bf16.shape
    num_row_tiles = S_pad // TILE_S
    return pl.pallas_call(
        _logits_kernel,
        out_shape=jax.ShapeDtypeStruct((S_pad, K_PAD), jnp.float32),
        grid=(num_row_tiles,),
        in_specs=[
            pl.BlockSpec((TILE_S, D), lambda i: (i, 0)),      # row tile of X
            pl.BlockSpec((D, K_PAD), lambda i: (0, 0)),       # W resident across rows
            pl.BlockSpec((1, K_PAD), lambda i: (0, 0)),       # bias resident
        ],
        out_specs=pl.BlockSpec((TILE_S, K_PAD), lambda i: (i, 0)),
        compiler_params=pltpu.CompilerParams(
            dimension_semantics=("parallel",)),               # 2x on v7x, free elsewhere
    )(x_bf16, w_bf16, b_f32)


# --------------------------- jitted device-side paths ---------------------------
@jax.jit
def _batched_logits(x_flat_f32, w_bf16, b_f32):
    """x_flat: [S, FEAT_DIM] f32 -> [S, K_WAY] f32 logits (one pallas_call)."""
    S = x_flat_f32.shape[0]
    S_pad = _round_up(max(S, TILE_S), TILE_S)
    x = jnp.zeros((S_pad, D_PAD), jnp.bfloat16)
    x = x.at[:S, :FEAT_DIM].set(x_flat_f32.astype(jnp.bfloat16))
    logits = pallas_linear_logits(x, w_bf16, b_f32)
    return logits[:S, :K_WAY]


@jax.jit
def _forward_impl(x, w_bf16, b_f32):
    # x: [B, 1, F, T_slice] (NCHW, mirrors spec.unsqueeze(0).unsqueeze(0)) -> [B, k_way]
    B = x.shape[0]
    x_flat = x.reshape(B, -1).astype(jnp.float32)
    return _batched_logits(x_flat, w_bf16, b_f32)


@jax.jit
def _predict_clips(clips, w_bf16, b_f32):
    """clips: [N, F, CLIP_LENGTH] f32 -> majority-vote predictions [N] int32.

    Builds all slice windows on device, runs one batched Pallas matmul over all
    N * NUM_SLICES slices, argmaxes per slice and majority-votes per clip."""
    N = clips.shape[0]
    slices = jnp.stack(
        [clips[:, :, s:s + SLICE_LENGTH] for s in SLICE_START_LIST], axis=1
    )                                                     # [N, 5, F, T_slice]
    x_flat = slices.reshape(N * NUM_SLICES, FEAT_DIM)
    logits = _batched_logits(x_flat, w_bf16, b_f32)       # [N*5, k_way]
    slice_labels = jnp.argmax(logits, axis=-1).reshape(N, NUM_SLICES)
    votes = jnp.sum(jax.nn.one_hot(slice_labels, K_WAY, dtype=jnp.int32), axis=1)
    # jnp.argmax => first max wins on ties (same deterministic tie-break as before).
    return jnp.argmax(votes, axis=-1)                     # [N]


# ---------------------------- host-side weighted F1 ------------------------------
def _weighted_f1(y_true, y_pred, num_classes):
    """Pure-Python weighted F1 (sklearn f1_score(average='weighted'), zero_division=0)."""
    total = len(y_true)
    f1_sum = 0.0
    for c in range(num_classes):
        tp = sum(1 for t, p in zip(y_true, y_pred) if t == c and p == c)
        fp = sum(1 for t, p in zip(y_true, y_pred) if t != c and p == c)
        fn = sum(1 for t, p in zip(y_true, y_pred) if t == c and p != c)
        support = tp + fn
        if support == 0:
            continue
        precision = tp / (tp + fp) if (tp + fp) > 0 else 0.0
        recall = tp / (tp + fn) if (tp + fn) > 0 else 0.0
        f1_c = (2.0 * precision * recall / (precision + recall)
                if (precision + recall) > 0 else 0.0)
        f1_sum += (support / float(total)) * f1_c
    return f1_sum


# ------------------------------ module-like wrapper -----------------------------
class FewShotTemplatePallas:
    """JAX/Pallas analogue of FewShotTemplate with a concrete linear `forward`."""

    def __init__(self, k_way, k_shot):
        self.k_way = k_way
        self.k_shot = k_shot
        self.is_train_log_muted = False
        # Deterministic parameter init (synthetic; no checkpoint load).
        kw, kb = jax.random.split(jax.random.PRNGKey(42))
        w = (jax.random.normal(kw, (FEAT_DIM, k_way), jnp.float32)
             * (1.0 / jnp.sqrt(FEAT_DIM)))
        b = jax.random.normal(kb, (1, k_way), jnp.float32) * 0.01
        # Pad D -> 5120 and K -> 128 once (lane-dense operands), cast W to bf16 once.
        self.weight = jnp.zeros((D_PAD, K_PAD), jnp.bfloat16).at[
            :FEAT_DIM, :k_way].set(w.astype(jnp.bfloat16))
        self.bias = jnp.zeros((1, K_PAD), jnp.float32).at[:, :k_way].set(b)

    # TODO(synk): forward_loss / set_train / set_test / train_loop are abstract or
    # optimizer-driven in the PyTorch template; no Pallas forward-pass equivalent needed.

    def forward(self, x):
        return _forward_impl(x, self.weight, self.bias)

    def test_loop(self, test_clip_data):
        # Original indexing: clip[0] = artist label, clip[2] = spectrogram.
        labels = [int(clip[0]) for clip in test_clip_data]
        clips = jnp.stack(
            [jnp.asarray(clip[2], jnp.float32) for clip in test_clip_data])
        preds_dev = _predict_clips(clips, self.weight, self.bias)
        preds = [int(p) for p in jax.device_get(preds_dev)]   # one host transfer
        count = len(labels)
        correct = sum(int(p == t) for p, t in zip(preds, labels))
        accuracy = correct / float(count)
        f1 = _weighted_f1(labels, preds, self.k_way)
        return accuracy, f1

    def mute_training_log(self):
        self.is_train_log_muted = True


# ------------------------------------ main --------------------------------------
if __name__ == "__main__":
    key = jax.random.PRNGKey(0)
    model = FewShotTemplatePallas(K_WAY, K_SHOT)

    # Synthetic "clips": (artist_label, _, spectrogram [F, CLIP_LENGTH]) triples,
    # mirroring clip[0]/clip[2] indexing in the original test_loop.
    k1, k2 = jax.random.split(key)
    test_clip_data = [
        (0, None, jax.random.normal(k1, (FREQ_BINS, CLIP_LENGTH), jnp.float32)),
        (1, None, jax.random.normal(k2, (FREQ_BINS, CLIP_LENGTH), jnp.float32)),
    ]

    # Single-slice forward through the Pallas kernel; block on the result.
    single_slice = test_clip_data[0][2][:, 0:SLICE_LENGTH][None, None, :, :]
    logits = model.forward(single_slice)
    jax.block_until_ready(logits)
    assert logits.shape == (1, K_WAY) and logits.dtype == jnp.float32
    assert bool(jnp.all(jnp.isfinite(logits)))

    # Fully batched test_loop: one pallas_call + one host transfer for all clips.
    acc, f1 = model.test_loop(test_clip_data)
    assert 0.0 <= acc <= 1.0
    assert 0.0 <= f1 <= 1.0

    print("KERNEL_OK")
</pallas_src>

<mosaic_0001>
module attributes {stable_mosaic.version = 11 : i64} {
  func.func @_logits_kernel(%arg0: i32, %arg1: memref<8x5120xbf16, #tpu.memory_space<vmem>>, %arg2: memref<5120x128xbf16, #tpu.memory_space<vmem>>, %arg3: memref<1x128xf32, #tpu.memory_space<vmem>>, %arg4: memref<8x128xf32, #tpu.memory_space<vmem>>) attributes {dimension_semantics = [#tpu.dimension_semantics<parallel>], iteration_bounds = array<i64: 1>, scalar_prefetch = 0 : i64, scratch_operands = 0 : i64, tpu.core_type = #tpu.core_type<tc>, window_params = [{transform_indices = @transform_0, window_bounds = array<i64: 8, 5120>}, {pipeline_mode = #tpu.pipeline_mode<synchronous>, transform_indices = @transform_1, window_bounds = array<i64: 5120, 128>}, {pipeline_mode = #tpu.pipeline_mode<synchronous>, transform_indices = @transform_2, window_bounds = array<i64: 1, 128>}, {transform_indices = @transform_3, window_bounds = array<i64: 8, 128>}]} {
    %c0 = arith.constant 0 : index
    %c0_0 = arith.constant 0 : index
    %0 = vector.load %arg1[%c0, %c0_0] : memref<8x5120xbf16, #tpu.memory_space<vmem>>, vector<8x5120xbf16>
    %c0_1 = arith.constant 0 : index
    %c0_2 = arith.constant 0 : index
    %1 = vector.load %arg2[%c0_1, %c0_2] : memref<5120x128xbf16, #tpu.memory_space<vmem>>, vector<5120x128xbf16>
    %cst = arith.constant dense<0.000000e+00> : vector<8x128xf32>
    %2 = tpu.matmul %0, %1, %cst {dimension_numbers = #tpu.dot_dimension_numbers<[1], [0], [0], [1], [0, 0, 1, 1], [], []>} : vector<8x5120xbf16>, vector<5120x128xbf16>, vector<8x128xf32> -> vector<8x128xf32>
    %c0_3 = arith.constant 0 : index
    %c0_4 = arith.constant 0 : index
    %3 = vector.load %arg3[%c0_3, %c0_4] : memref<1x128xf32, #tpu.memory_space<vmem>>, vector<1x128xf32>
    %4 = vector.broadcast %3 : vector<1x128xf32> to vector<8x128xf32>
    %5 = arith.addf %2, %4 : vector<8x128xf32>
    %c0_5 = arith.constant 0 : index
    %c0_6 = arith.constant 0 : index
    %6 = vector.load %arg4[%c0_5, %c0_6] : memref<8x128xf32, #tpu.memory_space<vmem>>, vector<8x128xf32>
    tpu.vector_store %arg4[%c0_5, %c0_6], %5 {strides = array<i32>} : memref<8x128xf32, #tpu.memory_space<vmem>>, vector<8x128xf32>,
    return
  }
  func.func @transform_0(%arg0: i32) -> (i32, i32) {
    %c0_i32 = arith.constant 0 : i32
    %c0_i32_0 = arith.constant 0 : i32
    return %arg0, %c0_i32 : i32, i32
  }
  func.func @transform_1(%arg0: i32) -> (i32, i32) {
    %c0_i32 = arith.constant 0 : i32
    %c0_i32_0 = arith.constant 0 : i32
    %c0_i32_1 = arith.constant 0 : i32
    return %c0_i32, %c0_i32_0 : i32, i32
  }
  func.func @transform_2(%arg0: i32) -> (i32, i32) {
    %c0_i32 = arith.constant 0 : i32
    %c0_i32_0 = arith.constant 0 : i32
    %c0_i32_1 = arith.constant 0 : i32
    return %c0_i32, %c0_i32_0 : i32, i32
  }
  func.func @transform_3(%arg0: i32) -> (i32, i32) {
    %c0_i32 = arith.constant 0 : i32
    %c0_i32_0 = arith.constant 0 : i32
    return %arg0, %c0_i32 : i32, i32
  }
}

</mosaic_0001>

<bundles_post_ra>
// kernel: _batched_logits.1
= control target key start
LH: loop header
LB: loop body
LE: loop exit
PB: predicated region body
PF: predicated region fallthrough
CT: control target
= control target key end

     0   :  { %8 = vsyncpa [#allocation3], 0  ;;  %s4886_s0 = inlined_call_operand.vmem [shape: bf16[8,5120], index: 0, kind: input, shape index: {}]   ;;  %s4887_s1 = inlined_call_operand.hbm [shape: bf16[5120,128], index: 1, kind: input, shape index: {}]   ;;  %s4888_s2 = inlined_call_operand.hbm [shape: f32[1,128], index: 2, kind: input, shape index: {}]   ;;  %s4889_s3 = inlined_call_operand.vmem [shape: f32[8,128], index: 3, kind: output, shape index: {}]  }
   0x1   :  { %9 = vsyncpa [#allocation5], 0  ;;  %s4784_s12 = smov [#allocation2]  }
   0x2   :  { %s17_s13 = sshll.u32 %s4784_s12, 4  ;;  %s18_s13 = int_to_ptr.vmem [resolvable:$true] %s17_s13 }
   0x3   :  { %s4748_s14 = scalar_lea.vmem %s18_s13, 40960  ;;  %p4753_p1 = scmp.lt.s32.totalorder %s18_s13, %s18_s13 }
   0x4   :  { %p4749_p0 = scmp.ne.s32.totalorder %s18_s13, %s4748_s14  ;;  %p4754_p2 = scmp.lt.s32.totalorder %s4748_s14, %s4748_s14 }
   0x6   :  { %p4755_p3 = por %p4754_p2, %p4753_p1 }
   0x8   :  { %p4756_p4 = pnand %p4755_p3, %p4749_p0 }
   0xa   :  { %4759 = shalt.err (!%p4756_p4)
}
   0xb   :  { %s4785_s15 = smov 64   ;;  %s4786_s16 = smov 4  }
   0xc   :  { %23 = dma.hbm_to_vmem [thread:$0]  %s4887_s1, 40960, %s18_s13, [#allocation3], %s4785_s15, %s4785_s15, %s4786_s16  }
   0xd   :  { %s4787_s19 = smov [#allocation4]  }
   0xe   :  { %s30_s20 = sshll.u32 %s4787_s19, 4  ;;  %s31_s20 = int_to_ptr.vmem [resolvable:$true] %s30_s20 }
   0xf   :  { %s4768_s21 = scalar_lea.vmem %s31_s20, 16  ;;  %s4772_s22 = scalar_lea.vmem %s31_s20, 32 }
  0x10   :  { %p4769_p5 = scmp.ne.s32.totalorder %s31_s20, %s4768_s21  ;;  %p4773_p6 = scmp.lt.s32.totalorder %s31_s20, %s31_s20 }
  0x11   :  { %p4774_p7 = scmp.lt.s32.totalorder %s4772_s22, %s4768_s21 }
  0x13   :  { %p4775_p8 = por %p4774_p7, %p4773_p6 }
  0x15   :  { %p4776_p9 = pnand %p4775_p8, %p4769_p5 }
  0x17   :  { %4779 = shalt.err (!%p4776_p9)
}
  0x18   :  { %33 = dma.hbm_to_vmem [thread:$0]  %s4888_s2, 16, %s31_s20, [#allocation5]  }
  0x19   :  { %4780 = dma.done.wait [#allocation3], 40960  }
  0x1a   :  { %4781 = vsyncadd [#allocation3], 4294926336 }
  0x1b   :  { %4782 = dma.done.wait [#allocation5], 16  }
  0x1c   :  { %4783 = vsyncadd [#allocation5], 4294967280  ;;  %v4380_v0 = vld [vmem:[#allocation2 + $0x78] sm:$0xff]   ;;  %v4384_v4 = vld [vmem:[#allocation2 + $0x70] sm:$0xff]  }
  0x1d   :  { %v4381_v1 = vld [vmem:[#allocation2 + $0xf8] sm:$0xff]   ;;  %3936 = vmatprep.subr.bf16.mxu0 %v4380_v0  ;;  %v4385_v5 = vld [vmem:[#allocation2 + $0xf0] sm:$0xff]   ;;  %v4388_v8 = vld [vmem:[#allocation2 + $0x68] sm:$0xff]  }
  0x1e   :  { %v4382_v2 = vld [vmem:[#allocation2 + $0x38] sm:$0xff]   ;;  %3958 = vmatprep.subr.bf16.mxu1 %v4381_v1  ;;  %v4386_v6 = vld [vmem:[#allocation2 + $0x30] sm:$0xff]   ;;  %v4389_v9 = vld [vmem:[#allocation2 + $0xe8] sm:$0xff]  }
  0x1f   :  { %v4383_v3 = vld [vmem:[#allocation2 + $0xb8] sm:$0xff]   ;;  %3937 = vmatpush3.bf16.msra.mxu0 %v4382_v2  ;;  %v4387_v7 = vld [vmem:[#allocation2 + $0xb0] sm:$0xff]   ;;  %v4390_v10 = vld [vmem:[#allocation2 + $0x28] sm:$0xff]  }
  0x20   :  { %3959 = vmatpush3.bf16.msra.mxu1 %v4383_v3  ;;  %3938 = vmatprep.subr.bf16.mxu0 %v4384_v4  ;;  %v4391_v11 = vld [vmem:[#allocation2 + $0xa8] sm:$0xff]   ;;  %v4392_v12 = vld [vmem:[#allocation2 + $0x60] sm:$0xff]   ;;  %v4396_v16 = vld [vmem:[#allocation2 + $0x58] sm:$0xff]  }
  0x21   :  { %3960 = vmatprep.subr.bf16.mxu1 %v4385_v5  ;;  %v4393_v13 = vld [vmem:[#allocation2 + $0xe0] sm:$0xff]   ;;  %v4397_v17 = vld [vmem:[#allocation2 + $0xd8] sm:$0xff]   ;;  %v4400_v20 = vld [vmem:[#allocation2 + $0x50] sm:$0xff]  }
  0x22   :  { %v4394_v14 = vld [vmem:[#allocation2 + $0x20] sm:$0xff]   ;;  %v4398_v18 = vld [vmem:[#allocation2 + $0x18] sm:$0xff]   ;;  %v4401_v21 = vld [vmem:[#allocation2 + $0xd0] sm:$0xff]  }
  0x23   :  { %3939 = vmatpush3.bf16.msra.mxu0 %v4386_v6  ;;  %v4395_v15 = vld [vmem:[#allocation2 + $0xa0] sm:$0xff]   ;;  %v4399_v19 = vld [vmem:[#allocation2 + $0x98] sm:$0xff]   ;;  %v4402_v22 = vld [vmem:[#allocation2 + $0x10] sm:$0xff]  }
  0x24   :  { %3961 = vmatpush3.bf16.msra.mxu1 %v4387_v7  ;;  %3940 = vmatprep.subr.bf16.mxu0 %v4388_v8  ;;  %v4403_v23 = vld [vmem:[#allocation2 + $0x90] sm:$0xff]   ;;  %v4404_v24 = vld [vmem:[#allocation2 + $0x48] sm:$0xff]   ;;  %v4408_v28 = vld [vmem:[#allocation2 + $0x40] sm:$0xff]  }
  0x25   :  { %3962 = vmatprep.subr.bf16.mxu1 %v4389_v9  ;;  %v4405_v25 = vld [vmem:[#allocation2 + $0xc8] sm:$0xff]   ;;  %v4409_v29 = vld [vmem:[#allocation2 + $0xc0] sm:$0xff]   ;;  %v4416_v38 = vld [vmem:[#allocation2 + $0x178] sm:$0xff]  }
  0x26   :  { %v4406_v26 = vld [vmem:[#allocation2 + $0x8] sm:$0xff]   ;;  %v4410_v30 = vld [vmem:[#allocation2] sm:$0xff]   ;;  %v4417_v39 = vld [vmem:[#allocation2 + $0x1f8] sm:$0xff]  }
  0x27   :  { %3941 = vmatpush3.bf16.msra.mxu0 %v4390_v10  ;;  %v4407_v27 = vld [vmem:[#allocation2 + $0x88] sm:$0xff]   ;;  %v4411_v31 = vld [vmem:[#allocation2 + $0x80] sm:$0xff]   ;;  %v4418_v40 = vld [vmem:[#allocation2 + $0x138] sm:$0xff]  }
  0x28   :  { %3963 = vmatpush3.bf16.msra.mxu1 %v4391_v11  ;;  %3942 = vmatprep.subr.bf16.mxu0 %v4392_v12  ;;  %v41_v32 = vld [vmem:[%s4886_s0] sm:$0xff]  ;;  %v42_v33 = vld [vmem:[%s4886_s0 + $0x8] sm:$0xff]  ;;  %v4419_v41 = vld [vmem:[#allocation2 + $0x1b8] sm:$0xff]  }
  0x29   :  { %3964 = vmatprep.subr.bf16.mxu1 %v4393_v13  ;;  %v3576_v34 = vcombine.low %v41_v32, %v41_v32  ;;  %v3577_v35 = vcombine.high %v41_v32, %v41_v32  ;;  %v3578_v36 = vcombine.low %v42_v33, %v42_v33  ;;  %v3579_v37 = vcombine.high %v42_v33, %v42_v33  ;;  %v4420_v42 = vld [vmem:[#allocation2 + $0x170] sm:$0xff]   ;;  %v4424_v46 = vld [vmem:[#allocation2 + $0x168] sm:$0xff]   ;;  %v4428_v50 = vld [vmem:[#allocation2 + $0x160] sm:$0xff]  }
  0x2a   :  { %v4421_v43 = vld [vmem:[#allocation2 + $0x1f0] sm:$0xff]   ;;  %v4425_v47 = vld [vmem:[#allocation2 + $0x1e8] sm:$0xff]   ;;  %v4429_v51 = vld [vmem:[#allocation2 + $0x1e0] sm:$0xff]  }
  0x2b   :  { %3943 = vmatpush3.bf16.msra.mxu0 %v4394_v14  ;;  %2800 = vmatprep.mubr.bf16.mxu0 %v3577_v35  ;;  %v4422_v44 = vld [vmem:[#allocation2 + $0x130] sm:$0xff]   ;;  %v4426_v48 = vld [vmem:[#allocation2 + $0x128] sm:$0xff]   ;;  %v4430_v52 = vld [vmem:[#allocation2 + $0x120] sm:$0xff]  }
  0x2c   :  { %3965 = vmatpush3.bf16.msra.mxu1 %v4395_v15  ;;  %3944 = vmatprep.subr.bf16.mxu0 %v4396_v16  ;;  %v4423_v45 = vld [vmem:[#allocation2 + $0x1b0] sm:$0xff]   ;;  %v4427_v49 = vld [vmem:[#allocation2 + $0x1a8] sm:$0xff]   ;;  %v4431_v53 = vld [vmem:[#allocation2 + $0x1a0] sm:$0xff]  }
  0x2d   :  { %3966 = vmatprep.subr.bf16.mxu1 %v4397_v17  ;;  %2840 = vmatprep.mubr.bf16.mxu1 %v3579_v37  ;;  %v4432_v54 = vld [vmem:[#allocation2 + $0x158] sm:$0xff]   ;;  %v4436_v58 = vld [vmem:[#allocation2 + $0x150] sm:$0xff]   ;;  %v4440_v62 = vld [vmem:[#allocation2 + $0x148] sm:$0xff]  }
  0x2e   :  { %v4433_v55 = vld [vmem:[#allocation2 + $0x1d8] sm:$0xff]   ;;  %v4437_v59 = vld [vmem:[#allocation2 + $0x1d0] sm:$0xff]   ;;  %v4441_v63 = vld [vmem:[#allocation2 + $0x1c8] sm:$0xff]  }
  0x2f   :  { %3945 = vmatpush3.bf16.msra.mxu0 %v4398_v18  ;;  %v4434_v56 = vld [vmem:[#allocation2 + $0x118] sm:$0xff]   ;;  %v4438_v60 = vld [vmem:[#allocation2 + $0x110] sm:$0xff]   ;;  %v4442_v0 = vld [vmem:[#allocation2 + $0x108] sm:$0xff]  }
  0x30   :  { %3967 = vmatpush3.bf16.msra.mxu1 %v4399_v19  ;;  %3946 = vmatprep.subr.bf16.mxu0 %v4400_v20  ;;  %v4435_v57 = vld [vmem:[#allocation2 + $0x198] sm:$0xff]   ;;  %v4439_v61 = vld [vmem:[#allocation2 + $0x190] sm:$0xff]   ;;  %v4443_v1 = vld [vmem:[#allocation2 + $0x188] sm:$0xff]  }
  0x31   :  { %3968 = vmatprep.subr.bf16.mxu1 %v4401_v21  ;;  %v4444_v2 = vld [vmem:[#allocation2 + $0x140] sm:$0xff]   ;;  %v43_v6 = vld [vmem:[%s4886_s0 + $0x10] sm:$0xff]  ;;  %v44_v9 = vld [vmem:[%s4886_s0 + $0x18] sm:$0xff] }
  0x32   :  { %v4445_v3 = vld [vmem:[#allocation2 + $0x1c0] sm:$0xff]   ;;  %v3580_v7 = vcombine.low %v43_v6, %v43_v6  ;;  %v3581_v8 = vcombine.high %v43_v6, %v43_v6  ;;  %v3582_v10 = vcombine.low %v44_v9, %v44_v9  ;;  %v3583_v11 = vcombine.high %v44_v9, %v44_v9  ;;  %v4452_v12 = vld [vmem:[#allocation2 + $0x278] sm:$0xff]   ;;  %v4456_v16 = vld [vmem:[#allocation2 + $0x270] sm:$0xff]  }
  0x33   :  { %3947 = vmatpush3.bf16.msra.mxu0 %v4402_v22  ;;  %v4446_v4 = vld [vmem:[#allocation2 + $0x100] sm:$0xff]   ;;  %v4453_v13 = vld [vmem:[#allocation2 + $0x2f8] sm:$0xff]   ;;  %v4457_v17 = vld [vmem:[#allocation2 + $0x2f0] sm:$0xff]  }
  0x34   :  { %3969 = vmatpush3.bf16.msra.mxu1 %v4403_v23  ;;  %3948 = vmatprep.subr.bf16.mxu0 %v4404_v24  ;;  %v4447_v5 = vld [vmem:[#allocation2 + $0x180] sm:$0xff]   ;;  %v4454_v14 = vld [vmem:[#allocation2 + $0x238] sm:$0xff]   ;;  %v4458_v18 = vld [vmem:[#allocation2 + $0x230] sm:$0xff]  }
  0x35   :  { %3970 = vmatprep.subr.bf16.mxu1 %v4405_v25  ;;  %v4455_v15 = vld [vmem:[#allocation2 + $0x2b8] sm:$0xff]   ;;  %v4459_v19 = vld [vmem:[#allocation2 + $0x2b0] sm:$0xff]   ;;  %v4460_v20 = vld [vmem:[#allocation2 + $0x268] sm:$0xff]  }
  0x36   :  { %v4461_v21 = vld [vmem:[#allocation2 + $0x2e8] sm:$0xff]   ;;  %v4464_v24 = vld [vmem:[#allocation2 + $0x260] sm:$0xff]   ;;  %v4472_v32 = vld [vmem:[#allocation2 + $0x250] sm:$0xff]  }
  0x37   :  { %3949 = vmatpush3.bf16.msra.mxu0 %v4406_v26  ;;  %v4462_v22 = vld [vmem:[#allocation2 + $0x228] sm:$0xff]   ;;  %v4465_v25 = vld [vmem:[#allocation2 + $0x2e0] sm:$0xff]   ;;  %v4473_v33 = vld [vmem:[#allocation2 + $0x2d0] sm:$0xff]  }
  0x38   :  { %3971 = vmatpush3.bf16.msra.mxu1 %v4407_v27  ;;  %3950 = vmatprep.subr.bf16.mxu0 %v4408_v28  ;;  %v4463_v23 = vld [vmem:[#allocation2 + $0x2a8] sm:$0xff]   ;;  %v4466_v26 = vld [vmem:[#allocation2 + $0x220] sm:$0xff]   ;;  %v4468_v28 = vld [vmem:[#allocation2 + $0x258] sm:$0xff]  }
  0x39   :  { %3972 = vmatprep.subr.bf16.mxu1 %v4409_v29  ;;  %v4467_v27 = vld [vmem:[#allocation2 + $0x2a0] sm:$0xff]   ;;  %v4469_v29 = vld [vmem:[#allocation2 + $0x2d8] sm:$0xff]   ;;  %v4475_v35 = vld [vmem:[#allocation2 + $0x290] sm:$0xff]  }
  0x3a   :  { %v4477_v37 = vld [vmem:[#allocation2 + $0x2c8] sm:$0xff]   ;;  %v4508_v6 = vld [vmem:[#allocation2 + $0x350] sm:$0xff]  }
  0x3b   :  { %3951 = vmatpush3.bf16.msra.mxu0 %v4410_v30  ;;  %v4470_v30 = vld [vmem:[#allocation2 + $0x218] sm:$0xff]   ;;  %v4511_v9 = vld [vmem:[#allocation2 + $0x390] sm:$0xff]  }
  0x3c   :  { %3973 = vmatpush3.bf16.msra.mxu1 %v4411_v31  ;;  %3980 = vmatprep.subr.bf16.mxu0 %v4416_v38  ;;  %v4471_v31 = vld [vmem:[#allocation2 + $0x298] sm:$0xff]   ;;  %v4478_v38 = vld [vmem:[#allocation2 + $0x208] sm:$0xff]  }
  0x3d   :  { %4002 = vmatprep.subr.bf16.mxu1 %v4417_v39  ;;  %v4479_v39 = vld [vmem:[#allocation2 + $0x288] sm:$0xff]  }
  0x3e   :  { %2801 = vmatmul.mubr.bf16.vlgmr.msra.gmra.mxu0 %v3576_v34  ;;  %v4474_v34 = vld [vmem:[#allocation2 + $0x210] sm:$0xff]  }
  0x3f   :  { %2841 = vmatmul.mubr.bf16.vlgmr.msra.gmra.mxu1 %v3578_v36  ;;  %3981 = vmatpush3.bf16.msra.mxu0 %v4418_v40  ;;  %v4476_v36 = vld [vmem:[#allocation2 + $0x248] sm:$0xff]   ;;  %v4480_v40 = vld [vmem:[#allocation2 + $0x240] sm:$0xff]  }
  0x40   :  { %4003 = vmatpush3.bf16.msra.mxu1 %v4419_v41  ;;  %3982 = vmatprep.subr.bf16.mxu0 %v4420_v42  ;;  %v4481_v41 = vld [vmem:[#allocation2 + $0x2c0] sm:$0xff]  }
  0x41   :  { %4004 = vmatprep.subr.bf16.mxu1 %v4421_v43  ;;  %2880 = vmatprep.mubr.bf16.mxu0 %v3581_v8  ;;  %v4482_v42 = vld [vmem:[#allocation2 + $0x200] sm:$0xff]   ;;  %v4510_v8 = vld [vmem:[#allocation2 + $0x310] sm:$0xff]  }
  0x42   :  { %2920 = vmatprep.mubr.bf16.mxu1 %v3583_v11  ;;  %v4483_v43 = vld [vmem:[#allocation2 + $0x280] sm:$0xff]   ;;  %v4513_v11 = vld [vmem:[#allocation2 + $0x3c8] sm:$0xff]  }
  0x43   :  { %3983 = vmatpush3.bf16.msra.mxu0 %v4422_v44  ;;  %v45_v44 = vld [vmem:[%s4886_s0 + $0x20] sm:$0xff] }
  0x44   :  { %4005 = vmatpush3.bf16.msra.mxu1 %v4423_v45  ;;  %3984 = vmatprep.subr.bf16.mxu0 %v4424_v46  ;;  %v46_v45 = vld [vmem:[%s4886_s0 + $0x28] sm:$0xff]  ;;  %v3584_v46 = vcombine.low %v45_v44, %v45_v44 }
  0x45   :  { %4006 = vmatprep.subr.bf16.mxu1 %v4425_v47  ;;  %v3585_v47 = vcombine.high %v45_v44, %v45_v44  ;;  %v4544_v44 = vld [vmem:[#allocation2 + $0x450] sm:$0xff]  }
  0x47   :  { %3985 = vmatpush3.bf16.msra.mxu0 %v4426_v48  ;;  %v3586_v48 = vcombine.low %v46_v45, %v46_v45 }
  0x48   :  { %4007 = vmatpush3.bf16.msra.mxu1 %v4427_v49  ;;  %3986 = vmatprep.subr.bf16.mxu0 %v4428_v50  ;;  %v3587_v49 = vcombine.high %v46_v45, %v46_v45  ;;  %v4488_v50 = vld [vmem:[#allocation2 + $0x378] sm:$0xff]   ;;  %v4545_v45 = vld [vmem:[#allocation2 + $0x4d0] sm:$0xff]  }
  0x49   :  { %4008 = vmatprep.subr.bf16.mxu1 %v4429_v51  ;;  %v4489_v51 = vld [vmem:[#allocation2 + $0x3f8] sm:$0xff]  }
  0x4b   :  { %3987 = vmatpush3.bf16.msra.mxu0 %v4430_v52  ;;  %v4490_v52 = vld [vmem:[#allocation2 + $0x338] sm:$0xff]  }
  0x4c   :  { %4009 = vmatpush3.bf16.msra.mxu1 %v4431_v53  ;;  %3988 = vmatprep.subr.bf16.mxu0 %v4432_v54  ;;  %v4491_v53 = vld [vmem:[#allocation2 + $0x3b8] sm:$0xff]   ;;  %v4492_v54 = vld [vmem:[#allocation2 + $0x370] sm:$0xff]  }
  0x4d   :  { %4010 = vmatprep.subr.bf16.mxu1 %v4433_v55  ;;  %v4493_v55 = vld [vmem:[#allocation2 + $0x3f0] sm:$0xff]  }
  0x4f   :  { %3989 = vmatpush3.bf16.msra.mxu0 %v4434_v56  ;;  %v4494_v56 = vld [vmem:[#allocation2 + $0x330] sm:$0xff]  }
  0x50   :  { %4011 = vmatpush3.bf16.msra.mxu1 %v4435_v57  ;;  %3990 = vmatprep.subr.bf16.mxu0 %v4436_v58  ;;  %v4495_v57 = vld [vmem:[#allocation2 + $0x3b0] sm:$0xff]   ;;  %v4496_v58 = vld [vmem:[#allocation2 + $0x368] sm:$0xff]  }
  0x51   :  { %4012 = vmatprep.subr.bf16.mxu1 %v4437_v59  ;;  %v4497_v59 = vld [vmem:[#allocation2 + $0x3e8] sm:$0xff]  }
  0x53   :  { %3991 = vmatpush3.bf16.msra.mxu0 %v4438_v60  ;;  %v4498_v60 = vld [vmem:[#allocation2 + $0x328] sm:$0xff]  }
  0x54   :  { %4013 = vmatpush3.bf16.msra.mxu1 %v4439_v61  ;;  %3992 = vmatprep.subr.bf16.mxu0 %v4440_v62  ;;  %v4499_v61 = vld [vmem:[#allocation2 + $0x3a8] sm:$0xff]   ;;  %v4500_v62 = vld [vmem:[#allocation2 + $0x360] sm:$0xff]  }
  0x55   :  { %4014 = vmatprep.subr.bf16.mxu1 %v4441_v63  ;;  %v4501_v63 = vld [vmem:[#allocation2 + $0x3e0] sm:$0xff]  }
  0x57   :  { %3993 = vmatpush3.bf16.msra.mxu0 %v4442_v0  ;;  %v4502_v0 = vld [vmem:[#allocation2 + $0x320] sm:$0xff]  }
  0x58   :  { %4015 = vmatpush3.bf16.msra.mxu1 %v4443_v1  ;;  %3994 = vmatprep.subr.bf16.mxu0 %v4444_v2  ;;  %v4503_v1 = vld [vmem:[#allocation2 + $0x3a0] sm:$0xff]   ;;  %v4504_v2 = vld [vmem:[#allocation2 + $0x358] sm:$0xff]  }
  0x59   :  { %4016 = vmatprep.subr.bf16.mxu1 %v4445_v3  ;;  %v4505_v3 = vld [vmem:[#allocation2 + $0x3d8] sm:$0xff]  }
  0x5b   :  { %3995 = vmatpush3.bf16.msra.mxu0 %v4446_v4  ;;  %v4506_v4 = vld [vmem:[#allocation2 + $0x318] sm:$0xff]  }
  0x5c   :  { %4017 = vmatpush3.bf16.msra.mxu1 %v4447_v5  ;;  %4024 = vmatprep.subr.bf16.mxu0 %v4452_v12  ;;  %v4507_v5 = vld [vmem:[#allocation2 + $0x398] sm:$0xff]   ;;  %v4514_v12 = vld [vmem:[#allocation2 + $0x308] sm:$0xff]  }
  0x5d   :  { %4046 = vmatprep.subr.bf16.mxu1 %v4453_v13  ;;  %v4515_v13 = vld [vmem:[#allocation2 + $0x388] sm:$0xff]  }
  0x5e   :  { %2881 = vmatmul.mubr.bf16.vlgmr.msra.gmra.mxu0 %v3580_v7  ;;  %v4509_v7 = vld [vmem:[#allocation2 + $0x3d0] sm:$0xff]  }
  0x5f   :  { %2921 = vmatmul.mubr.bf16.vlgmr.msra.gmra.mxu1 %v3582_v10  ;;  %4025 = vmatpush3.bf16.msra.mxu0 %v4454_v14  ;;  %v4512_v10 = vld [vmem:[#allocation2 + $0x348] sm:$0xff]   ;;  %v4516_v14 = vld [vmem:[#allocation2 + $0x340] sm:$0xff]  }
  0x60   :  { %4047 = vmatpush3.bf16.msra.mxu1 %v4455_v15  ;;  %4026 = vmatprep.subr.bf16.mxu0 %v4456_v16  ;;  %v4517_v15 = vld [vmem:[#allocation2 + $0x3c0] sm:$0xff]  }
  0x61   :  { %4048 = vmatprep.subr.bf16.mxu1 %v4457_v17  ;;  %2960 = vmatprep.mubr.bf16.mxu0 %v3585_v47  ;;  %v4518_v16 = vld [vmem:[#allocation2 + $0x300] sm:$0xff]   ;;  %v4547_v47 = vld [vmem:[#allocation2 + $0x490] sm:$0xff]  }
  0x62   :  { %3000 = vmatprep.mubr.bf16.mxu1 %v3587_v49  ;;  %v4519_v17 = vld [vmem:[#allocation2 + $0x380] sm:$0xff]   ;;  %v4549_v49 = vld [vmem:[#allocation2 + $0x4c8] sm:$0xff]  }
  0x63   :  { %4027 = vmatpush3.bf16.msra.mxu0 %v4458_v18  ;;  %v47_v18 = vld [vmem:[%s4886_s0 + $0x30] sm:$0xff] }
  0x64   :  { %4049 = vmatpush3.bf16.msra.mxu1 %v4459_v19  ;;  %4028 = vmatprep.subr.bf16.mxu0 %v4460_v20  ;;  %v48_v19 = vld [vmem:[%s4886_s0 + $0x38] sm:$0xff]  ;;  %v3588_v20 = vcombine.low %v47_v18, %v47_v18 }
  0x65   :  { %4050 = vmatprep.subr.bf16.mxu1 %v4461_v21  ;;  %v3589_v21 = vcombine.high %v47_v18, %v47_v18  ;;  %v4580_v18 = vld [vmem:[#allocation2 + $0x550] sm:$0xff]  }
  0x67   :  { %4029 = vmatpush3.bf16.msra.mxu0 %v4462_v22  ;;  %v3590_v22 = vcombine.low %v48_v19, %v48_v19 }
  0x68   :  { %4051 = vmatpush3.bf16.msra.mxu1 %v4463_v23  ;;  %4030 = vmatprep.subr.bf16.mxu0 %v4464_v24  ;;  %v4524_v23 = vld [vmem:[#allocation2 + $0x478] sm:$0xff]   ;;  %v3591_v24 = vcombine.high %v48_v19, %v48_v19  ;;  %v4581_v19 = vld [vmem:[#allocation2 + $0x5d0] sm:$0xff]  }
  0x69   :  { %4052 = vmatprep.subr.bf16.mxu1 %v4465_v25  ;;  %v4525_v25 = vld [vmem:[#allocation2 + $0x4f8] sm:$0xff]  }
  0x6b   :  { %4031 = vmatpush3.bf16.msra.mxu0 %v4466_v26  ;;  %v4526_v26 = vld [vmem:[#allocation2 + $0x438] sm:$0xff]  }
  0x6c   :  { %4053 = vmatpush3.bf16.msra.mxu1 %v4467_v27  ;;  %4032 = vmatprep.subr.bf16.mxu0 %v4468_v28  ;;  %v4527_v27 = vld [vmem:[#allocation2 + $0x4b8] sm:$0xff]   ;;  %v4528_v28 = vld [vmem:[#allocation2 + $0x470] sm:$0xff]  }
  0x6d   :  { %4054 = vmatprep.subr.bf16.mxu1 %v4469_v29  ;;  %v4529_v29 = vld [vmem:[#allocation2 + $0x4f0] sm:$0xff]  }
  0x6f   :  { %4033 = vmatpush3.bf16.msra.mxu0 %v4470_v30  ;;  %v4530_v30 = vld [vmem:[#allocation2 + $0x430] sm:$0xff]  }
  0x70   :  { %4055 = vmatpush3.bf16.msra.mxu1 %v4471_v31  ;;  %4034 = vmatprep.subr.bf16.mxu0 %v4472_v32  ;;  %v4531_v31 = vld [vmem:[#allocation2 + $0x4b0] sm:$0xff]   ;;  %v4532_v32 = vld [vmem:[#allocation2 + $0x468] sm:$0xff]  }
  0x71   :  { %4056 = vmatprep.subr.bf16.mxu1 %v4473_v33  ;;  %v4533_v33 = vld [vmem:[#allocation2 + $0x4e8] sm:$0xff]  }
  0x73   :  { %4035 = vmatpush3.bf16.msra.mxu0 %v4474_v34  ;;  %v4534_v34 = vld [vmem:[#allocation2 + $0x428] sm:$0xff]  }
  0x74   :  { %4057 = vmatpush3.bf16.msra.mxu1 %v4475_v35  ;;  %4036 = vmatprep.subr.bf16.mxu0 %v4476_v36  ;;  %v4535_v35 = vld [vmem:[#allocation2 + $0x4a8] sm:$0xff]   ;;  %v4536_v36 = vld [vmem:[#allocation2 + $0x460] sm:$0xff]  }
  0x75   :  { %4058 = vmatprep.subr.bf16.mxu1 %v4477_v37  ;;  %v4537_v37 = vld [vmem:[#allocation2 + $0x4e0] sm:$0xff]  }
  0x77   :  { %4037 = vmatpush3.bf16.msra.mxu0 %v4478_v38  ;;  %v4538_v38 = vld [vmem:[#allocation2 + $0x420] sm:$0xff]  }
  0x78   :  { %4059 = vmatpush3.bf16.msra.mxu1 %v4479_v39  ;;  %4038 = vmatprep.subr.bf16.mxu0 %v4480_v40  ;;  %v4539_v39 = vld [vmem:[#allocation2 + $0x4a0] sm:$0xff]   ;;  %v4540_v40 = vld [vmem:[#allocation2 + $0x458] sm:$0xff]  }
  0x79   :  { %4060 = vmatprep.subr.bf16.mxu1 %v4481_v41  ;;  %v4541_v41 = vld [vmem:[#allocation2 + $0x4d8] sm:$0xff]  }
  0x7b   :  { %4039 = vmatpush3.bf16.msra.mxu0 %v4482_v42  ;;  %v4542_v42 = vld [vmem:[#allocation2 + $0x418] sm:$0xff]  }
  0x7c   :  { %4061 = vmatpush3.bf16.msra.mxu1 %v4483_v43  ;;  %4068 = vmatprep.subr.bf16.mxu0 %v4488_v50  ;;  %v4543_v43 = vld [vmem:[#allocation2 + $0x498] sm:$0xff]   ;;  %v4550_v50 = vld [vmem:[#allocation2 + $0x408] sm:$0xff]  }
  0x7d   :  { %4090 = vmatprep.subr.bf16.mxu1 %v4489_v51  ;;  %v4551_v51 = vld [vmem:[#allocation2 + $0x488] sm:$0xff]  }
  0x7e   :  { %2961 = vmatmul.mubr.bf16.vlgmr.msra.gmra.mxu0 %v3584_v46  ;;  %v4546_v46 = vld [vmem:[#allocation2 + $0x410] sm:$0xff]  }
  0x7f   :  { %3001 = vmatmul.mubr.bf16.vlgmr.msra.gmra.mxu1 %v3586_v48  ;;  %4069 = vmatpush3.bf16.msra.mxu0 %v4490_v52  ;;  %v4548_v48 = vld [vmem:[#allocation2 + $0x448] sm:$0xff]   ;;  %v4552_v52 = vld [vmem:[#allocation2 + $0x440] sm:$0xff]  }
  0x80   :  { %4091 = vmatpush3.bf16.msra.mxu1 %v4491_v53  ;;  %4070 = vmatprep.subr.bf16.mxu0 %v4492_v54  ;;  %v4553_v53 = vld [vmem:[#allocation2 + $0x4c0] sm:$0xff]  }
  0x81   :  { %4092 = vmatprep.subr.bf16.mxu1 %v4493_v55  ;;  %3040 = vmatprep.mubr.bf16.mxu0 %v3589_v21  ;;  %v4554_v54 = vld [vmem:[#allocation2 + $0x400] sm:$0xff]   ;;  %v4583_v21 = vld [vmem:[#allocation2 + $0x590] sm:$0xff]  }
  0x82   :  { %3080 = vmatprep.mubr.bf16.mxu1 %v3591_v24  ;;  %v4555_v55 = vld [vmem:[#allocation2 + $0x480] sm:$0xff]   ;;  %v4586_v24 = vld [vmem:[#allocation2 + $0x508] sm:$0xff]  }
  0x83   :  { %4071 = vmatpush3.bf16.msra.mxu0 %v4494_v56  ;;  %v49_v56 = vld [vmem:[%s4886_s0 + $0x40] sm:$0xff] }
  0x84   :  { %4093 = vmatpush3.bf16.msra.mxu1 %v4495_v57  ;;  %4072 = vmatprep.subr.bf16.mxu0 %v4496_v58  ;;  %v3592_v57 = vcombine.low %v49_v56, %v49_v56  ;;  %v3593_v58 = vcombine.high %v49_v56, %v49_v56  ;;  %v4616_v56 = vld [vmem:[#allocation2 + $0x650] sm:$0xff]  }
  0x85   :  { %4094 = vmatprep.subr.bf16.mxu1 %v4497_v59  ;;  %v50_v59 = vld [vmem:[%s4886_s0 + $0x48] sm:$0xff] }
  0x87   :  { %4073 = vmatpush3.bf16.msra.mxu0 %v4498_v60  ;;  %v3594_v60 = vcombine.low %v50_v59, %v50_v59 }
  0x88   :  { %4095 = vmatpush3.bf16.msra.mxu1 %v4499_v61  ;;  %4074 = vmatprep.subr.bf16.mxu0 %v4500_v62  ;;  %v3595_v61 = vcombine.high %v50_v59, %v50_v59  ;;  %v4560_v62 = vld [vmem:[#allocation2 + $0x578] sm:$0xff]   ;;  %v4619_v59 = vld [vmem:[#allocation2 + $0x690] sm:$0xff]  }
  0x89   :  { %4096 = vmatprep.subr.bf16.mxu1 %v4501_v63  ;;  %v4561_v63 = vld [vmem:[#allocation2 + $0x5f8] sm:$0xff]  }
  0x8b   :  { %4075 = vmatpush3.bf16.msra.mxu0 %v4502_v0  ;;  %v4562_v0 = vld [vmem:[#allocation2 + $0x538] sm:$0xff]  }
  0x8c   :  { %4097 = vmatpush3.bf16.msra.mxu1 %v4503_v1  ;;  %4076 = vmatprep.subr.bf16.mxu0 %v4504_v2  ;;  %v4563_v1 = vld [vmem:[#allocation2 + $0x5b8] sm:$0xff]   ;;  %v4564_v2 = vld [vmem:[#allocation2 + $0x570] sm:$0xff]  }
  0x8d   :  { %4098 = vmatprep.subr.bf16.mxu1 %v4505_v3  ;;  %v4565_v3 = vld [vmem:[#allocation2 + $0x5f0] sm:$0xff]  }
  0x8f   :  { %4077 = vmatpush3.bf16.msra.mxu0 %v4506_v4  ;;  %v4566_v4 = vld [vmem:[#allocation2 + $0x530] sm:$0xff]  }
  0x90   :  { %4099 = vmatpush3.bf16.msra.mxu1 %v4507_v5  ;;  %4078 = vmatprep.subr.bf16.mxu0 %v4508_v6  ;;  %v4567_v5 = vld [vmem:[#allocation2 + $0x5b0] sm:$0xff]   ;;  %v4568_v6 = vld [vmem:[#allocation2 + $0x568] sm:$0xff]  }
  0x91   :  { %4100 = vmatprep.subr.bf16.mxu1 %v4509_v7  ;;  %v4569_v7 = vld [vmem:[#allocation2 + $0x5e8] sm:$0xff]  }
  0x93   :  { %4079 = vmatpush3.bf16.msra.mxu0 %v4510_v8  ;;  %v4570_v8 = vld [vmem:[#allocation2 + $0x528] sm:$0xff]  }
  0x94   :  { %4101 = vmatpush3.bf16.msra.mxu1 %v4511_v9  ;;  %4080 = vmatprep.subr.bf16.mxu0 %v4512_v10  ;;  %v4571_v9 = vld [vmem:[#allocation2 + $0x5a8] sm:$0xff]   ;;  %v4572_v10 = vld [vmem:[#allocation2 + $0x560] sm:$0xff]  }
  0x95   :  { %4102 = vmatprep.subr.bf16.mxu1 %v4513_v11  ;;  %v4573_v11 = vld [vmem:[#allocation2 + $0x5e0] sm:$0xff]  }
  0x97   :  { %4081 = vmatpush3.bf16.msra.mxu0 %v4514_v12  ;;  %v4574_v12 = vld [vmem:[#allocation2 + $0x520] sm:$0xff]  }
  0x98   :  { %4103 = vmatpush3.bf16.msra.mxu1 %v4515_v13  ;;  %4082 = vmatprep.subr.bf16.mxu0 %v4516_v14  ;;  %v4575_v13 = vld [vmem:[#allocation2 + $0x5a0] sm:$0xff]   ;;  %v4576_v14 = vld [vmem:[#allocation2 + $0x558] sm:$0xff]  }
  0x99   :  { %4104 = vmatprep.subr.bf16.mxu1 %v4517_v15  ;;  %v4577_v15 = vld [vmem:[#allocation2 + $0x5d8] sm:$0xff]  }
  0x9b   :  { %4083 = vmatpush3.bf16.msra.mxu0 %v4518_v16  ;;  %v4578_v16 = vld [vmem:[#allocation2 + $0x518] sm:$0xff]  }
  0x9c   :  { %4105 = vmatpush3.bf16.msra.mxu1 %v4519_v17  ;;  %4112 = vmatprep.subr.bf16.mxu0 %v4524_v23  ;;  %v4579_v17 = vld [vmem:[#allocation2 + $0x598] sm:$0xff]   ;;  %v4585_v23 = vld [vmem:[#allocation2 + $0x5c8] sm:$0xff]  }
  0x9d   :  { %4134 = vmatprep.subr.bf16.mxu1 %v4525_v25  ;;  %v4587_v25 = vld [vmem:[#allocation2 + $0x588] sm:$0xff]  }
  0x9e   :  { %3041 = vmatmul.mubr.bf16.vlgmr.msra.gmra.mxu0 %v3588_v20  ;;  %v4582_v20 = vld [vmem:[#allocation2 + $0x510] sm:$0xff]  }
  0x9f   :  { %3081 = vmatmul.mubr.bf16.vlgmr.msra.gmra.mxu1 %v3590_v22  ;;  %4113 = vmatpush3.bf16.msra.mxu0 %v4526_v26  ;;  %v4584_v22 = vld [vmem:[#allocation2 + $0x548] sm:$0xff]   ;;  %v4588_v26 = vld [vmem:[#allocation2 + $0x540] sm:$0xff]  }
  0xa0   :  { %4135 = vmatpush3.bf16.msra.mxu1 %v4527_v27  ;;  %4114 = vmatprep.subr.bf16.mxu0 %v4528_v28  ;;  %v4589_v27 = vld [vmem:[#allocation2 + $0x5c0] sm:$0xff]  }
  0xa1   :  { %4136 = vmatprep.subr.bf16.mxu1 %v4529_v29  ;;  %3120 = vmatprep.mubr.bf16.mxu0 %v3593_v58  ;;  %v4590_v28 = vld [vmem:[#allocation2 + $0x500] sm:$0xff]   ;;  %v4618_v58 = vld [vmem:[#allocation2 + $0x610] sm:$0xff]  }
  0xa2   :  { %3160 = vmatprep.mubr.bf16.mxu1 %v3595_v61  ;;  %v4591_v29 = vld [vmem:[#allocation2 + $0x580] sm:$0xff]   ;;  %v4621_v61 = vld [vmem:[#allocation2 + $0x6c8] sm:$0xff]  }
  0xa3   :  { %4115 = vmatpush3.bf16.msra.mxu0 %v4530_v30  ;;  %v51_v30 = vld [vmem:[%s4886_s0 + $0x50] sm:$0xff] }
  0xa4   :  { %4137 = vmatpush3.bf16.msra.mxu1 %v4531_v31  ;;  %4116 = vmatprep.subr.bf16.mxu0 %v4532_v32  ;;  %v52_v31 = vld [vmem:[%s4886_s0 + $0x58] sm:$0xff]  ;;  %v3596_v32 = vcombine.low %v51_v30, %v51_v30 }
  0xa5   :  { %4138 = vmatprep.subr.bf16.mxu1 %v4533_v33  ;;  %v3597_v33 = vcombine.high %v51_v30, %v51_v30  ;;  %v4639_v30 = vld [vmem:[#allocation2 + $0x7b0] sm:$0xff]  }
  0xa7   :  { %4117 = vmatpush3.bf16.msra.mxu0 %v4534_v34  ;;  %v3598_v34 = vcombine.low %v52_v31, %v52_v31 }
  0xa8   :  { %4139 = vmatpush3.bf16.msra.mxu1 %v4535_v35  ;;  %4118 = vmatprep.subr.bf16.mxu0 %v4536_v36  ;;  %v3599_v35 = vcombine.high %v52_v31, %v52_v31  ;;  %v4596_v36 = vld [vmem:[#allocation2 + $0x678] sm:$0xff]   ;;  %v4640_v31 = vld [vmem:[#allocation2 + $0x768] sm:$0xff]  }
  0xa9   :  { %4140 = vmatprep.subr.bf16.mxu1 %v4537_v37  ;;  %v4597_v37 = vld [vmem:[#allocation2 + $0x6f8] sm:$0xff]  }
  0xab   :  { %4119 = vmatpush3.bf16.msra.mxu0 %v4538_v38  ;;  %v4598_v38 = vld [vmem:[#allocation2 + $0x638] sm:$0xff]  }
  0xac   :  { %4141 = vmatpush3.bf16.msra.mxu1 %v4539_v39  ;;  %4120 = vmatprep.subr.bf16.mxu0 %v4540_v40  ;;  %v4599_v39 = vld [vmem:[#allocation2 + $0x6b8] sm:$0xff]   ;;  %v4600_v40 = vld [vmem:[#allocation2 + $0x670] sm:$0xff]  }
  0xad   :  { %4142 = vmatprep.subr.bf16.mxu1 %v4541_v41  ;;  %v4601_v41 = vld [vmem:[#allocation2 + $0x6f0] sm:$0xff]  }
  0xaf   :  { %4121 = vmatpush3.bf16.msra.mxu0 %v4542_v42  ;;  %v4602_v42 = vld [vmem:[#allocation2 + $0x630] sm:$0xff]  }
  0xb0   :  { %4143 = vmatpush3.bf16.msra.mxu1 %v4543_v43  ;;  %4122 = vmatprep.subr.bf16.mxu0 %v4544_v44  ;;  %v4603_v43 = vld [vmem:[#allocation2 + $0x6b0] sm:$0xff]   ;;  %v4604_v44 = vld [vmem:[#allocation2 + $0x668] sm:$0xff]  }
  0xb1   :  { %4144 = vmatprep.subr.bf16.mxu1 %v4545_v45  ;;  %v4605_v45 = vld [vmem:[#allocation2 + $0x6e8] sm:$0xff]  }
  0xb3   :  { %4123 = vmatpush3.bf16.msra.mxu0 %v4546_v46  ;;  %v4606_v46 = vld [vmem:[#allocation2 + $0x628] sm:$0xff]  }
  0xb4   :  { %4145 = vmatpush3.bf16.msra.mxu1 %v4547_v47  ;;  %4124 = vmatprep.subr.bf16.mxu0 %v4548_v48  ;;  %v4607_v47 = vld [vmem:[#allocation2 + $0x6a8] sm:$0xff]   ;;  %v4608_v48 = vld [vmem:[#allocation2 + $0x660] sm:$0xff]  }
  0xb5   :  { %4146 = vmatprep.subr.bf16.mxu1 %v4549_v49  ;;  %v4609_v49 = vld [vmem:[#allocation2 + $0x6e0] sm:$0xff]  }
  0xb7   :  { %4125 = vmatpush3.bf16.msra.mxu0 %v4550_v50  ;;  %v4610_v50 = vld [vmem:[#allocation2 + $0x620] sm:$0xff]  }
  0xb8   :  { %4147 = vmatpush3.bf16.msra.mxu1 %v4551_v51  ;;  %4126 = vmatprep.subr.bf16.mxu0 %v4552_v52  ;;  %v4611_v51 = vld [vmem:[#allocation2 + $0x6a0] sm:$0xff]   ;;  %v4612_v52 = vld [vmem:[#allocation2 + $0x658] sm:$0xff]  }
  0xb9   :  { %4148 = vmatprep.subr.bf16.mxu1 %v4553_v53  ;;  %v4613_v53 = vld [vmem:[#allocation2 + $0x6d8] sm:$0xff]  }
  0xbb   :  { %4127 = vmatpush3.bf16.msra.mxu0 %v4554_v54  ;;  %v4614_v54 = vld [vmem:[#allocation2 + $0x618] sm:$0xff]  }
  0xbc   :  { %4149 = vmatpush3.bf16.msra.mxu1 %v4555_v55  ;;  %4156 = vmatprep.subr.bf16.mxu0 %v4560_v62  ;;  %v4615_v55 = vld [vmem:[#allocation2 + $0x698] sm:$0xff]   ;;  %v4622_v62 = vld [vmem:[#allocation2 + $0x608] sm:$0xff]  }
  0xbd   :  { %4178 = vmatprep.subr.bf16.mxu1 %v4561_v63  ;;  %v4623_v63 = vld [vmem:[#allocation2 + $0x688] sm:$0xff]  }
  0xbe   :  { %3121 = vmatmul.mubr.bf16.vlgmr.msra.gmra.mxu0 %v3592_v57  ;;  %v4617_v57 = vld [vmem:[#allocation2 + $0x6d0] sm:$0xff]  }
  0xbf   :  { %3161 = vmatmul.mubr.bf16.vlgmr.msra.gmra.mxu1 %v3594_v60  ;;  %4157 = vmatpush3.bf16.msra.mxu0 %v4562_v0  ;;  %v4620_v60 = vld [vmem:[#allocation2 + $0x648] sm:$0xff]   ;;  %v4624_v0 = vld [vmem:[#allocation2 + $0x640] sm:$0xff]  }
  0xc0   :  { %4179 = vmatpush3.bf16.msra.mxu1 %v4563_v1  ;;  %4158 = vmatprep.subr.bf16.mxu0 %v4564_v2  ;;  %v4625_v1 = vld [vmem:[#allocation2 + $0x6c0] sm:$0xff]  }
  0xc1   :  { %4180 = vmatprep.subr.bf16.mxu1 %v4565_v3  ;;  %3200 = vmatprep.mubr.bf16.mxu0 %v3597_v33  ;;  %v4626_v2 = vld [vmem:[#allocation2 + $0x600] sm:$0xff]   ;;  %v4642_v33 = vld [vmem:[#allocation2 + $0x728] sm:$0xff]  }
  0xc2   :  { %3240 = vmatprep.mubr.bf16.mxu1 %v3599_v35  ;;  %v4627_v3 = vld [vmem:[#allocation2 + $0x680] sm:$0xff]  }
  0xc3   :  { %4159 = vmatpush3.bf16.msra.mxu0 %v4566_v4  ;;  %v53_v4 = vld [vmem:[%s4886_s0 + $0x60] sm:$0xff] }
  0xc4   :  { %4181 = vmatpush3.bf16.msra.mxu1 %v4567_v5  ;;  %4160 = vmatprep.subr.bf16.mxu0 %v4568_v6  ;;  %v54_v5 = vld [vmem:[%s4886_s0 + $0x68] sm:$0xff]  ;;  %v4644_v35 = vld [vmem:[#allocation2 + $0x760] sm:$0xff]  }
  0xc5   :  { %4182 = vmatprep.subr.bf16.mxu1 %v4569_v7 }
  0xc7   :  { %4161 = vmatpush3.bf16.msra.mxu0 %v4570_v8  ;;  %v3600_v8 = vcombine.low %v53_v4, %v53_v4 }
  0xc8   :  { %4183 = vmatpush3.bf16.msra.mxu1 %v4571_v9  ;;  %4162 = vmatprep.subr.bf16.mxu0 %v4572_v10  ;;  %v3601_v9 = vcombine.high %v53_v4, %v53_v4  ;;  %v3602_v10 = vcombine.low %v54_v5, %v54_v5 }
  0xc9   :  { %4184 = vmatprep.subr.bf16.mxu1 %v4573_v11  ;;  %v4632_v11 = vld [vmem:[#allocation2 + $0x778] sm:$0xff]  }
  0xcb   :  { %4163 = vmatpush3.bf16.msra.mxu0 %v4574_v12  ;;  %v3603_v12 = vcombine.high %v54_v5, %v54_v5 }
  0xcc   :  { %4185 = vmatpush3.bf16.msra.mxu1 %v4575_v13  ;;  %4164 = vmatprep.subr.bf16.mxu0 %v4576_v14  ;;  %v4633_v13 = vld [vmem:[#allocation2 + $0x7f8] sm:$0xff]  }
  0xcd   :  { %4186 = vmatprep.subr.bf16.mxu1 %v4577_v15 }
  0xcf   :  { %4165 = vmatpush3.bf16.msra.mxu0 %v4578_v16  ;;  %v4634_v16 = vld [vmem:[#allocation2 + $0x738] sm:$0xff]  }
  0xd0   :  { %4187 = vmatpush3.bf16.msra.mxu1 %v4579_v17  ;;  %4166 = vmatprep.subr.bf16.mxu0 %v4580_v18 }
  0xd1   :  { %4188 = vmatprep.subr.bf16.mxu1 %v4581_v19  ;;  %v4635_v19 = vld [vmem:[#allocation2 + $0x7b8] sm:$0xff]  }
  0xd3   :  { %4167 = vmatpush3.bf16.msra.mxu0 %v4582_v20  ;;  %v3575_v20 = vld [vmem:[#allocation4] ss:$0 sm:$0xff] }
  0xd4   :  { %4189 = vmatpush3.bf16.msra.mxu1 %v4583_v21  ;;  %4168 = vmatprep.subr.bf16.mxu0 %v4584_v22 }
  0xd5   :  { %4190 = vmatprep.subr.bf16.mxu1 %v4585_v23 }
  0xd7   :  { %4169 = vmatpush3.bf16.msra.mxu0 %v4586_v24  ;;  %v4636_v24 = vld [vmem:[#allocation2 + $0x770] sm:$0xff]  }
  0xd8   :  { %4191 = vmatpush3.bf16.msra.mxu1 %v4587_v25  ;;  %4170 = vmatprep.subr.bf16.mxu0 %v4588_v26  ;;  %v4637_v25 = vld [vmem:[#allocation2 + $0x7f0] sm:$0xff]  }
  0xd9   :  { %4192 = vmatprep.subr.bf16.mxu1 %v4589_v27 }
  0xdb   :  { %4171 = vmatpush3.bf16.msra.mxu0 %v4590_v28 }
  0xdc   :  { %4193 = vmatpush3.bf16.msra.mxu1 %v4591_v29  ;;  %4200 = vmatprep.subr.bf16.mxu0 %v4596_v36  ;;  %v4638_v29 = vld [vmem:[#allocation2 + $0x730] sm:$0xff]   ;;  %v4645_v36 = vld [vmem:[#allocation2 + $0x7e0] sm:$0xff]  }
  0xdd   :  { %4222 = vmatprep.subr.bf16.mxu1 %v4597_v37  ;;  %v4646_v37 = vld [vmem:[#allocation2 + $0x720] sm:$0xff]  }
  0xde   :  { %3201 = vmatmul.mubr.bf16.vlgmr.msra.gmra.mxu0 %v3596_v32  ;;  %v4641_v32 = vld [vmem:[#allocation2 + $0x7e8] sm:$0xff]  }
  0xdf   :  { %3241 = vmatmul.mubr.bf16.vlgmr.msra.gmra.mxu1 %v3598_v34  ;;  %4201 = vmatpush3.bf16.msra.mxu0 %v4598_v38  ;;  %v4643_v34 = vld [vmem:[#allocation2 + $0x7a8] sm:$0xff]   ;;  %v4647_v38 = vld [vmem:[#allocation2 + $0x7a0] sm:$0xff]  }
  0xe0   :  { %4223 = vmatpush3.bf16.msra.mxu1 %v4599_v39  ;;  %4202 = vmatprep.subr.bf16.mxu0 %v4600_v40  ;;  %v4648_v39 = vld [vmem:[#allocation2 + $0x758] sm:$0xff]  }
  0xe1   :  { %4224 = vmatprep.subr.bf16.mxu1 %v4601_v41  ;;  %3280 = vmatprep.mubr.bf16.mxu0 %v3601_v9  ;;  %v4649_v40 = vld [vmem:[#allocation2 + $0x7d8] sm:$0xff]  }
  0xe2   :  { %3320 = vmatprep.mubr.bf16.mxu1 %v3603_v12  ;;  %v4650_v41 = vld [vmem:[#allocation2 + $0x718] sm:$0xff]  }
  0xe3   :  { %4203 = vmatpush3.bf16.msra.mxu0 %v4602_v42  ;;  %v4651_v42 = vld [vmem:[#allocation2 + $0x798] sm:$0xff]  }
  0xe4   :  { %4225 = vmatpush3.bf16.msra.mxu1 %v4603_v43  ;;  %4204 = vmatprep.subr.bf16.mxu0 %v4604_v44  ;;  %v4652_v43 = vld [vmem:[#allocation2 + $0x750] sm:$0xff]  }
  0xe5   :  { %4226 = vmatprep.subr.bf16.mxu1 %v4605_v45  ;;  %v4653_v44 = vld [vmem:[#allocation2 + $0x7d0] sm:$0xff]  }
  0xe6   :  { %v4654_v45 = vld [vmem:[#allocation2 + $0x710] sm:$0xff]  }
  0xe7   :  { %4205 = vmatpush3.bf16.msra.mxu0 %v4606_v46  ;;  %v4655_v46 = vld [vmem:[#allocation2 + $0x790] sm:$0xff]  }
  0xe8   :  { %4227 = vmatpush3.bf16.msra.mxu1 %v4607_v47  ;;  %4206 = vmatprep.subr.bf16.mxu0 %v4608_v48  ;;  %v4656_v47 = vld [vmem:[#allocation2 + $0x748] sm:$0xff]  }
  0xe9   :  { %4228 = vmatprep.subr.bf16.mxu1 %v4609_v49  ;;  %v4657_v48 = vld [vmem:[#allocation2 + $0x7c8] sm:$0xff]  }
  0xea   :  { %v4658_v49 = vld [vmem:[#allocation2 + $0x708] sm:$0xff]  }
  0xeb   :  { %4207 = vmatpush3.bf16.msra.mxu0 %v4610_v50  ;;  %v4659_v50 = vld [vmem:[#allocation2 + $0x788] sm:$0xff]  }
  0xec   :  { %4229 = vmatpush3.bf16.msra.mxu1 %v4611_v51  ;;  %4208 = vmatprep.subr.bf16.mxu0 %v4612_v52  ;;  %v4660_v51 = vld [vmem:[#allocation2 + $0x740] sm:$0xff]  }
  0xed   :  { %4230 = vmatprep.subr.bf16.mxu1 %v4613_v53  ;;  %v4661_v52 = vld [vmem:[#allocation2 + $0x7c0] sm:$0xff]  }
  0xee   :  { %v4662_v53 = vld [vmem:[#allocation2 + $0x700] sm:$0xff]  }
  0xef   :  { %4209 = vmatpush3.bf16.msra.mxu0 %v4614_v54  ;;  %v4663_v54 = vld [vmem:[#allocation2 + $0x780] sm:$0xff]  }
  0xf0   :  { %4231 = vmatpush3.bf16.msra.mxu1 %v4615_v55  ;;  %4210 = vmatprep.subr.bf16.mxu0 %v4616_v56  ;;  %v55_v55 = vld [vmem:[%s4886_s0 + $0x70] sm:$0xff]  ;;  %v56_v56 = vld [vmem:[%s4886_s0 + $0x78] sm:$0xff] }
  0xf1   :  { %4232 = vmatprep.subr.bf16.mxu1 %v4617_v57 }
  0xf3   :  { %4211 = vmatpush3.bf16.msra.mxu0 %v4618_v58 }
  0xf4   :  { %4233 = vmatpush3.bf16.msra.mxu1 %v4619_v59  ;;  %4212 = vmatprep.subr.bf16.mxu0 %v4620_v60  ;;  %v3604_v59 = vcombine.low %v55_v55, %v55_v55  ;;  %v3605_v60 = vcombine.high %v55_v55, %v55_v55 }
  0xf5   :  { %4234 = vmatprep.subr.bf16.mxu1 %v4621_v61  ;;  %v3606_v61 = vcombine.low %v56_v56, %v56_v56 }
  0xf7   :  { %4213 = vmatpush3.bf16.msra.mxu0 %v4622_v62  ;;  %v4668_v62 = vld [vmem:[#allocation2 + $0x878] sm:$0xff]  }
  0xf8   :  { %4235 = vmatpush3.bf16.msra.mxu1 %v4623_v63  ;;  %4214 = vmatprep.subr.bf16.mxu0 %v4624_v0  ;;  %v3607_v63 = vcombine.high %v56_v56, %v56_v56  ;;  %v4669_v0 = vld [vmem:[#allocation2 + $0x8f8] sm:$0xff]  }
  0xf9   :  { %4236 = vmatprep.subr.bf16.mxu1 %v4625_v1 }
  0xfb   :  { %4215 = vmatpush3.bf16.msra.mxu0 %v4626_v2 }
  0xfc   :  { %4237 = vmatpush3.bf16.msra.mxu1 %v4627_v3  ;;  %4244 = vmatprep.subr.bf16.mxu0 %v4632_v11  ;;  %v4670_v3 = vld [vmem:[#allocation2 + $0x838] sm:$0xff]   ;;  %v4673_v11 = vld [vmem:[#allocation2 + $0x8f0] sm:$0xff]  }
  0xfd   :  { %4266 = vmatprep.subr.bf16.mxu1 %v4633_v13 }
  0xfe   :  { %v3952_v6 = vpop.f32.mrf.mxu0  ;;  %3281 = vmatmul.mubr.bf16.vlgmr.msra.gmra.mxu0 %v3600_v8 }
  0xff   :  { %v3974_v7 = vpop.f32.mrf.mxu1  ;;  %3321 = vmatmul.mubr.bf16.vlgmr.msra.gmra.mxu1 %v3602_v10  ;;  %4245 = vmatpush3.bf16.msra.mxu0 %v4634_v16  ;;  %v4672_v10 = vld [vmem:[#allocation2 + $0x870] sm:$0xff]  }
 0x100   :  { %v3953_v14 = vpop.f32.mrf.mxu0  ;;  %4267 = vmatpush3.bf16.msra.mxu1 %v4635_v19  ;;  %4246 = vmatprep.subr.bf16.mxu0 %v4636_v24  ;;  %v4675_v16 = vld [vmem:[#allocation2 + $0x8b0] sm:$0xff]   ;;  %v4678_v19 = vld [vmem:[#allocation2 + $0x828] sm:$0xff]   ;;  %v4683_v24 = vld [vmem:[#allocation2 + $0x8a0] sm:$0xff]  }
 0x101   :  { %v3975_v15 = vpop.f32.mrf.mxu1  ;;  %v3954_v17 = vadd.f32 %v3953_v14, %v3952_v6  ;;  %4268 = vmatprep.subr.bf16.mxu1 %v4637_v25  ;;  %3360 = vmatprep.mubr.bf16.mxu0 %v3605_v60  ;;  %v4671_v6 = vld [vmem:[#allocation2 + $0x8b8] sm:$0xff]   ;;  %v4708_v60 = vld [vmem:[#allocation2 + $0x970] sm:$0xff]  }
 0x102   :  { %v3976_v18 = vadd.f32 %v3975_v15, %v3974_v7  ;;  %v3955_v21 = vpop.f32.mrf.mxu0  ;;  %3400 = vmatprep.mubr.bf16.mxu1 %v3607_v63  ;;  %v4674_v15 = vld [vmem:[#allocation2 + $0x830] sm:$0xff]   ;;  %v4684_v25 = vld [vmem:[#allocation2 + $0x858] sm:$0xff]  }
 0x103   :  { %v3977_v22 = vpop.f32.mrf.mxu1  ;;  %v2803_v23 = vadd.f32 %v3954_v17, %v3575_v20  ;;  %4247 = vmatpush3.bf16.msra.mxu0 %v4638_v29  ;;  %v4676_v17 = vld [vmem:[#allocation2 + $0x868] sm:$0xff]   ;;  %v4680_v21 = vld [vmem:[#allocation2 + $0x860] sm:$0xff]   ;;  %v4688_v29 = vld [vmem:[#allocation2 + $0x850] sm:$0xff]  }
 0x104   :  { %v3956_v26 = vpop.f32.mrf.mxu0  ;;  %4269 = vmatpush3.bf16.msra.mxu1 %v4639_v30  ;;  %4248 = vmatprep.subr.bf16.mxu0 %v4640_v31  ;;  %v4679_v20 = vld [vmem:[#allocation2 + $0x8a8] sm:$0xff]   ;;  %v4681_v22 = vld [vmem:[#allocation2 + $0x8e0] sm:$0xff]   ;;  %v4689_v30 = vld [vmem:[#allocation2 + $0x8d0] sm:$0xff]  }
 0x105   :  { %v3978_v27 = vpop.f32.mrf.mxu1  ;;  %v4856_v28 = vadd.f32 %v3976_v18, %v2803_v23  ;;  %4270 = vmatprep.subr.bf16.mxu1 %v4641_v32  ;;  %v4677_v18 = vld [vmem:[#allocation2 + $0x8e8] sm:$0xff]   ;;  %v4682_v23 = vld [vmem:[#allocation2 + $0x820] sm:$0xff]   ;;  %v4685_v26 = vld [vmem:[#allocation2 + $0x8d8] sm:$0xff]  }
 0x106   :  { %v4686_v27 = vld [vmem:[#allocation2 + $0x818] sm:$0xff]   ;;  %v4690_v31 = vld [vmem:[#allocation2 + $0x810] sm:$0xff]  }
 0x107   :  { %4249 = vmatpush3.bf16.msra.mxu0 %v4642_v33  ;;  %v4691_v32 = vld [vmem:[#allocation2 + $0x890] sm:$0xff]   ;;  %v4692_v33 = vld [vmem:[#allocation2 + $0x848] sm:$0xff]  }
 0x108   :  { %4271 = vmatpush3.bf16.msra.mxu1 %v4643_v34  ;;  %4250 = vmatprep.subr.bf16.mxu0 %v4644_v35  ;;  %v4693_v34 = vld [vmem:[#allocation2 + $0x8c8] sm:$0xff]   ;;  %v4709_v63 = vld [vmem:[#allocation2 + $0x9f0] sm:$0xff]  }
 0x109   :  { %4272 = vmatprep.subr.bf16.mxu1 %v4645_v36  ;;  %v4694_v35 = vld [vmem:[#allocation2 + $0x808] sm:$0xff]  }
 0x10a   :  { %v4695_v36 = vld [vmem:[#allocation2 + $0x888] sm:$0xff]  }
 0x10b   :  { %4251 = vmatpush3.bf16.msra.mxu0 %v4646_v37  ;;  %v4696_v37 = vld [vmem:[#allocation2 + $0x840] sm:$0xff]  }
 0x10c   :  { %4273 = vmatpush3.bf16.msra.mxu1 %v4647_v38  ;;  %4252 = vmatprep.subr.bf16.mxu0 %v4648_v39  ;;  %v4697_v38 = vld [vmem:[#allocation2 + $0x8c0] sm:$0xff]  }
 0x10d   :  { %4274 = vmatprep.subr.bf16.mxu1 %v4649_v40  ;;  %v4698_v39 = vld [vmem:[#allocation2 + $0x800] sm:$0xff]  }
 0x10e   :  { %v4699_v40 = vld [vmem:[#allocation2 + $0x880] sm:$0xff]  }
 0x10f   :  { %4253 = vmatpush3.bf16.msra.mxu0 %v4650_v41  ;;  %v57_v41 = vld [vmem:[%s4886_s0 + $0x80] sm:$0xff] }
 0x110   :  { %4275 = vmatpush3.bf16.msra.mxu1 %v4651_v42  ;;  %4254 = vmatprep.subr.bf16.mxu0 %v4652_v43  ;;  %v3608_v43 = vcombine.low %v57_v41, %v57_v41 }
 0x111   :  { %4276 = vmatprep.subr.bf16.mxu1 %v4653_v44  ;;  %v3609_v44 = vcombine.high %v57_v41, %v57_v41 }
 0x113   :  { %4255 = vmatpush3.bf16.msra.mxu0 %v4654_v45  ;;  %v58_v45 = vld [vmem:[%s4886_s0 + $0x88] sm:$0xff] }
 0x114   :  { %4277 = vmatpush3.bf16.msra.mxu1 %v4655_v46  ;;  %4256 = vmatprep.subr.bf16.mxu0 %v4656_v47  ;;  %v3610_v47 = vcombine.low %v58_v45, %v58_v45 }
 0x115   :  { %4278 = vmatprep.subr.bf16.mxu1 %v4657_v48  ;;  %v3611_v48 = vcombine.high %v58_v45, %v58_v45 }
 0x117   :  { %4257 = vmatpush3.bf16.msra.mxu0 %v4658_v49  ;;  %v4704_v49 = vld [vmem:[#allocation2 + $0x978] sm:$0xff]  }
 0x118   :  { %4279 = vmatpush3.bf16.msra.mxu1 %v4659_v50  ;;  %4258 = vmatprep.subr.bf16.mxu0 %v4660_v51  ;;  %v4705_v51 = vld [vmem:[#allocation2 + $0x9f8] sm:$0xff]  }
 0x119   :  { %4280 = vmatprep.subr.bf16.mxu1 %v4661_v52 }
 0x11b   :  { %4259 = vmatpush3.bf16.msra.mxu0 %v4662_v53 }
 0x11c   :  { %4281 = vmatpush3.bf16.msra.mxu1 %v4663_v54  ;;  %4288 = vmatprep.subr.bf16.mxu0 %v4668_v62  ;;  %v4706_v54 = vld [vmem:[#allocation2 + $0x938] sm:$0xff]  }
 0x11d   :  { %4310 = vmatprep.subr.bf16.mxu1 %v4669_v0 }
 0x11e   :  { %v3996_v57 = vpop.f32.mrf.mxu0  ;;  %3361 = vmatmul.mubr.bf16.vlgmr.msra.gmra.mxu0 %v3604_v59 }
 0x11f   :  { %v4018_v58 = vpop.f32.mrf.mxu1  ;;  %3401 = vmatmul.mubr.bf16.vlgmr.msra.gmra.mxu1 %v3606_v61  ;;  %4289 = vmatpush3.bf16.msra.mxu0 %v4670_v3  ;;  %v4712_v3 = vld [vmem:[#allocation2 + $0x968] sm:$0xff]  }
 0x120   :  { %v3997_v1 = vpop.f32.mrf.mxu0  ;;  %4311 = vmatpush3.bf16.msra.mxu1 %v4671_v6  ;;  %4290 = vmatprep.subr.bf16.mxu0 %v4672_v10  ;;  %v4715_v6 = vld [vmem:[#allocation2 + $0x9a8] sm:$0xff]   ;;  %v4719_v10 = vld [vmem:[#allocation2 + $0x9a0] sm:$0xff]  }
 0x121   :  { %v4019_v2 = vpop.f32.mrf.mxu1  ;;  %v3998_v4 = vadd.f32 %v3997_v1, %v3996_v57  ;;  %4312 = vmatprep.subr.bf16.mxu1 %v4673_v11  ;;  %3440 = vmatprep.mubr.bf16.mxu0 %v3609_v44  ;;  %v4707_v57 = vld [vmem:[#allocation2 + $0x9b8] sm:$0xff]   ;;  %v4710_v1 = vld [vmem:[#allocation2 + $0x930] sm:$0xff]  }
 0x122   :  { %v4020_v5 = vadd.f32 %v4019_v2, %v4018_v58  ;;  %v3999_v7 = vpop.f32.mrf.mxu0  ;;  %3480 = vmatprep.mubr.bf16.mxu1 %v3611_v48  ;;  %v4711_v2 = vld [vmem:[#allocation2 + $0x9b0] sm:$0xff]   ;;  %v4720_v11 = vld [vmem:[#allocation2 + $0x958] sm:$0xff]  }
 0x123   :  { %v4021_v8 = vpop.f32.mrf.mxu1  ;;  %v2883_v9 = vadd.f32 %v3998_v4, %v4856_v28  ;;  %4291 = vmatpush3.bf16.msra.mxu0 %v4674_v15  ;;  %v4687_v28 = vld [vmem:[#allocation2 + $0x898] sm:$0xff]   ;;  %v4713_v4 = vld [vmem:[#allocation2 + $0x9e8] sm:$0xff]   ;;  %v4716_v7 = vld [vmem:[#allocation2 + $0x960] sm:$0xff]  }
 0x124   :  { %v4000_v12 = vpop.f32.mrf.mxu0  ;;  %4313 = vmatpush3.bf16.msra.mxu1 %v4675_v16  ;;  %4292 = vmatprep.subr.bf16.mxu0 %v4676_v17  ;;  %v4717_v8 = vld [vmem:[#allocation2 + $0x9e0] sm:$0xff]   ;;  %v4724_v15 = vld [vmem:[#allocation2 + $0x950] sm:$0xff]  }
 0x125   :  { %v4022_v13 = vpop.f32.mrf.mxu1  ;;  %v4865_v14 = vadd.f32 %v4020_v5, %v2883_v9  ;;  %4314 = vmatprep.subr.bf16.mxu1 %v4677_v18  ;;  %v4714_v5 = vld [vmem:[#allocation2 + $0x928] sm:$0xff]   ;;  %v4718_v9 = vld [vmem:[#allocation2 + $0x920] sm:$0xff]   ;;  %v4721_v12 = vld [vmem:[#allocation2 + $0x9d8] sm:$0xff]  }
 0x126   :  { %v4722_v13 = vld [vmem:[#allocation2 + $0x918] sm:$0xff]   ;;  %v4725_v16 = vld [vmem:[#allocation2 + $0x9d0] sm:$0xff]  }
 0x127   :  { %4293 = vmatpush3.bf16.msra.mxu0 %v4678_v19  ;;  %v4726_v17 = vld [vmem:[#allocation2 + $0x910] sm:$0xff]   ;;  %v4728_v19 = vld [vmem:[#allocation2 + $0x948] sm:$0xff]  }
 0x128   :  { %4315 = vmatpush3.bf16.msra.mxu1 %v4679_v20  ;;  %4294 = vmatprep.subr.bf16.mxu0 %v4680_v21  ;;  %v4727_v18 = vld [vmem:[#allocation2 + $0x990] sm:$0xff]   ;;  %v4729_v20 = vld [vmem:[#allocation2 + $0x9c8] sm:$0xff]  }
 0x129   :  { %4316 = vmatprep.subr.bf16.mxu1 %v4681_v22  ;;  %v4730_v21 = vld [vmem:[#allocation2 + $0x908] sm:$0xff]  }
 0x12a   :  { %v4731_v22 = vld [vmem:[#allocation2 + $0x988] sm:$0xff]  }
 0x12b   :  { %4295 = vmatpush3.bf16.msra.mxu0 %v4682_v23  ;;  %v4732_v23 = vld [vmem:[#allocation2 + $0x940] sm:$0xff]  }
 0x12c   :  { %4317 = vmatpush3.bf16.msra.mxu1 %v4683_v24  ;;  %4296 = vmatprep.subr.bf16.mxu0 %v4684_v25  ;;  %v4733_v24 = vld [vmem:[#allocation2 + $0x9c0] sm:$0xff]  }
 0x12d   :  { %4318 = vmatprep.subr.bf16.mxu1 %v4685_v26  ;;  %v4734_v25 = vld [vmem:[#allocation2 + $0x900] sm:$0xff]  }
 0x12e   :  { %v4735_v26 = vld [vmem:[#allocation2 + $0x980] sm:$0xff]  }
 0x12f   :  { %4297 = vmatpush3.bf16.msra.mxu0 %v4686_v27  ;;  %v59_v27 = vld [vmem:[%s4886_s0 + $0x90] sm:$0xff] }
 0x130   :  { %4319 = vmatpush3.bf16.msra.mxu1 %v4687_v28  ;;  %4298 = vmatprep.subr.bf16.mxu0 %v4688_v29  ;;  %v60_v28 = vld [vmem:[%s4886_s0 + $0x98] sm:$0xff] }
 0x131   :  { %4320 = vmatprep.subr.bf16.mxu1 %v4689_v30  ;;  %v3612_v30 = vcombine.low %v59_v27, %v59_v27 }
 0x133   :  { %4299 = vmatpush3.bf16.msra.mxu0 %v4690_v31  ;;  %v3613_v31 = vcombine.high %v59_v27, %v59_v27 }
 0x134   :  { %4321 = vmatpush3.bf16.msra.mxu1 %v4691_v32  ;;  %4300 = vmatprep.subr.bf16.mxu0 %v4692_v33  ;;  %v3614_v32 = vcombine.low %v60_v28, %v60_v28  ;;  %v3615_v33 = vcombine.high %v60_v28, %v60_v28 }
 0x135   :  { %4322 = vmatprep.subr.bf16.mxu1 %v4693_v34 }
 0x137   :  { %4301 = vmatpush3.bf16.msra.mxu0 %v4694_v35 }
 0x138   :  { %4323 = vmatpush3.bf16.msra.mxu1 %v4695_v36  ;;  %4302 = vmatprep.subr.bf16.mxu0 %v4696_v37 }
 0x139   :  { %4324 = vmatprep.subr.bf16.mxu1 %v4697_v38 }
 0x13b   :  { %4303 = vmatpush3.bf16.msra.mxu0 %v4698_v39 }
 0x13c   :  { %4325 = vmatpush3.bf16.msra.mxu1 %v4699_v40  ;;  %4332 = vmatprep.subr.bf16.mxu0 %v4704_v49 }
 0x13d   :  { %4354 = vmatprep.subr.bf16.mxu1 %v4705_v51 }
 0x13e   :  { %v4040_v42 = vpop.f32.mrf.mxu0  ;;  %3441 = vmatmul.mubr.bf16.vlgmr.msra.gmra.mxu0 %v3608_v43 }
 0x13f   :  { %v4062_v46 = vpop.f32.mrf.mxu1  ;;  %3481 = vmatmul.mubr.bf16.vlgmr.msra.gmra.mxu1 %v3610_v47  ;;  %4333 = vmatpush3.bf16.msra.mxu0 %v4706_v54 }
 0x140   :  { %v4041_v50 = vpop.f32.mrf.mxu0  ;;  %4355 = vmatpush3.bf16.msra.mxu1 %v4707_v57  ;;  %4334 = vmatprep.subr.bf16.mxu0 %v4708_v60 }
 0x141   :  { %v4042_v52 = vadd.f32 %v4041_v50, %v4040_v42  ;;  %v4063_v53 = vpop.f32.mrf.mxu1  ;;  %4356 = vmatprep.subr.bf16.mxu1 %v4709_v63  ;;  %3520 = vmatprep.mubr.bf16.mxu0 %v3613_v31 }
 0x142   :  { %v4064_v55 = vadd.f32 %v4063_v53, %v4062_v46  ;;  %v4043_v56 = vpop.f32.mrf.mxu0  ;;  %3560 = vmatprep.mubr.bf16.mxu1 %v3615_v33 }
 0x143   :  { %v2963_v58 = vadd.f32 %v4042_v52, %v4865_v14  ;;  %v4065_v59 = vpop.f32.mrf.mxu1  ;;  %4335 = vmatpush3.bf16.msra.mxu0 %v4710_v1  ;;  %v4723_v14 = vld [vmem:[#allocation2 + $0x998] sm:$0xff]  }
 0x144   :  { %v4044_v61 = vpop.f32.mrf.mxu0  ;;  %4357 = vmatpush3.bf16.msra.mxu1 %v4711_v2  ;;  %4336 = vmatprep.subr.bf16.mxu0 %v4712_v3 }
 0x145   :  { %v4874_v62 = vadd.f32 %v4064_v55, %v2963_v58  ;;  %v4066_v0 = vpop.f32.mrf.mxu1  ;;  %4358 = vmatprep.subr.bf16.mxu1 %v4713_v4 }
 0x147   :  { %4337 = vmatpush3.bf16.msra.mxu0 %v4714_v5 }
 0x148   :  { %4359 = vmatpush3.bf16.msra.mxu1 %v4715_v6  ;;  %4338 = vmatprep.subr.bf16.mxu0 %v4716_v7 }
 0x149   :  { %4360 = vmatprep.subr.bf16.mxu1 %v4717_v8 }
 0x14b   :  { %4339 = vmatpush3.bf16.msra.mxu0 %v4718_v9 }
 0x14c   :  { %4361 = vmatpush3.bf16.msra.mxu1 %v4719_v10  ;;  %4340 = vmatprep.subr.bf16.mxu0 %v4720_v11 }
 0x14d   :  { %4362 = vmatprep.subr.bf16.mxu1 %v4721_v12 }
 0x14f   :  { %4341 = vmatpush3.bf16.msra.mxu0 %v4722_v13 }
 0x150   :  { %4363 = vmatpush3.bf16.msra.mxu1 %v4723_v14  ;;  %4342 = vmatprep.subr.bf16.mxu0 %v4724_v15 }
 0x151   :  { %4364 = vmatprep.subr.bf16.mxu1 %v4725_v16 }
 0x153   :  { %4343 = vmatpush3.bf16.msra.mxu0 %v4726_v17 }
 0x154   :  { %4365 = vmatpush3.bf16.msra.mxu1 %v4727_v18  ;;  %4344 = vmatprep.subr.bf16.mxu0 %v4728_v19 }
 0x155   :  { %4366 = vmatprep.subr.bf16.mxu1 %v4729_v20 }
 0x157   :  { %4345 = vmatpush3.bf16.msra.mxu0 %v4730_v21 }
 0x158   :  { %4367 = vmatpush3.bf16.msra.mxu1 %v4731_v22  ;;  %4346 = vmatprep.subr.bf16.mxu0 %v4732_v23 }
 0x159   :  { %4368 = vmatprep.subr.bf16.mxu1 %v4733_v24 }
 0x15b   :  { %4347 = vmatpush3.bf16.msra.mxu0 %v4734_v25 }
 0x15c   :  { %4369 = vmatpush3.bf16.msra.mxu1 %v4735_v26 }
 0x15e   :  { %v4084_v29 = vpop.f32.mrf.mxu0  ;;  %3521 = vmatmul.mubr.bf16.vlgmr.msra.gmra.mxu0 %v3612_v30 }
 0x15f   :  { %v4106_v34 = vpop.f32.mrf.mxu1  ;;  %3561 = vmatmul.mubr.bf16.vlgmr.msra.gmra.mxu1 %v3614_v32 }
 0x160   :  { %v4085_v35 = vpop.f32.mrf.mxu0 }
 0x161   :  { %v4086_v36 = vadd.f32 %v4085_v35, %v4084_v29  ;;  %v4107_v37 = vpop.f32.mrf.mxu1 }
 0x162   :  { %v4108_v38 = vadd.f32 %v4107_v37, %v4106_v34  ;;  %v4087_v39 = vpop.f32.mrf.mxu0 }
 0x163   :  { %v3043_v40 = vadd.f32 %v4086_v36, %v4874_v62  ;;  %v4109_v41 = vpop.f32.mrf.mxu1 }
 0x164   :  { %v4088_v42 = vpop.f32.mrf.mxu0 }
 0x165   :  { %v3083_v43 = vadd.f32 %v4108_v38, %v3043_v40  ;;  %v4110_v44 = vpop.f32.mrf.mxu1 }
 0x17e   :  { %v4128_v45 = vpop.f32.mrf.mxu0 }
 0x17f   :  { %v4150_v46 = vpop.f32.mrf.mxu1 }
 0x180   :  { %v4129_v47 = vpop.f32.mrf.mxu0 }
 0x181   :  { %v4151_v48 = vpop.f32.mrf.mxu1  ;;  %v4130_v49 = vadd.f32 %v4129_v47, %v4128_v45 }
 0x182   :  { %v4152_v50 = vadd.f32 %v4151_v48, %v4150_v46  ;;  %v4131_v51 = vpop.f32.mrf.mxu0 }
 0x183   :  { %v4153_v52 = vpop.f32.mrf.mxu1  ;;  %v3123_v53 = vadd.f32 %v4130_v49, %v3083_v43 }
 0x184   :  { %v4132_v54 = vpop.f32.mrf.mxu0 }
 0x185   :  { %v4154_v55 = vpop.f32.mrf.mxu1  ;;  %v3163_v56 = vadd.f32 %v4152_v50, %v3123_v53 }
 0x19e   :  { %v4172_v57 = vpop.f32.mrf.mxu0 }
 0x19f   :  { %v4194_v58 = vpop.f32.mrf.mxu1 }
 0x1a0   :  { %v4173_v59 = vpop.f32.mrf.mxu0 }
 0x1a1   :  { %v4174_v60 = vadd.f32 %v4173_v59, %v4172_v57  ;;  %v4195_v61 = vpop.f32.mrf.mxu1 }
 0x1a2   :  { %v4196_v62 = vadd.f32 %v4195_v61, %v4194_v58  ;;  %v4175_v63 = vpop.f32.mrf.mxu0 }
 0x1a3   :  { %v3203_v0 = vadd.f32 %v4174_v60, %v3163_v56  ;;  %v4197_v1 = vpop.f32.mrf.mxu1 }
 0x1a4   :  { %v4176_v2 = vpop.f32.mrf.mxu0 }
 0x1a5   :  { %v3243_v3 = vadd.f32 %v4196_v62, %v3203_v0  ;;  %v4198_v4 = vpop.f32.mrf.mxu1 }
 0x1be   :  { %v4216_v5 = vpop.f32.mrf.mxu0 }
 0x1bf   :  { %v4238_v6 = vpop.f32.mrf.mxu1 }
 0x1c0   :  { %v4217_v7 = vpop.f32.mrf.mxu0 }
 0x1c1   :  { %v4218_v8 = vadd.f32 %v4217_v7, %v4216_v5  ;;  %v4239_v9 = vpop.f32.mrf.mxu1 }
 0x1c2   :  { %v4240_v10 = vadd.f32 %v4239_v9, %v4238_v6  ;;  %v4219_v11 = vpop.f32.mrf.mxu0 }
 0x1c3   :  { %v3283_v12 = vadd.f32 %v4218_v8, %v3243_v3  ;;  %v4241_v13 = vpop.f32.mrf.mxu1 }
 0x1c4   :  { %v4220_v14 = vpop.f32.mrf.mxu0 }
 0x1c5   :  { %v3323_v15 = vadd.f32 %v4240_v10, %v3283_v12  ;;  %v4242_v16 = vpop.f32.mrf.mxu1 }
 0x1de   :  { %v4260_v17 = vpop.f32.mrf.mxu0 }
 0x1df   :  { %v4282_v18 = vpop.f32.mrf.mxu1 }
 0x1e0   :  { %v4261_v19 = vpop.f32.mrf.mxu0 }
 0x1e1   :  { %v4283_v20 = vpop.f32.mrf.mxu1  ;;  %v4262_v33 = vadd.f32 %v4261_v19, %v4260_v17 }
 0x1e2   :  { %v4263_v21 = vpop.f32.mrf.mxu0  ;;  %v4284_v35 = vadd.f32 %v4283_v20, %v4282_v18 }
 0x1e3   :  { %v4285_v22 = vpop.f32.mrf.mxu1  ;;  %v3363_v34 = vadd.f32 %v4262_v33, %v3323_v15 }
 0x1e4   :  { %v4264_v23 = vpop.f32.mrf.mxu0 }
 0x1e5   :  { %v4286_v24 = vpop.f32.mrf.mxu1  ;;  %v3403_v37 = vadd.f32 %v4284_v35, %v3363_v34 }
 0x1fe   :  { %v4304_v25 = vpop.f32.mrf.mxu0 }
 0x1ff   :  { %v4326_v26 = vpop.f32.mrf.mxu1 }
 0x200   :  { %v4305_v27 = vpop.f32.mrf.mxu0 }
 0x201   :  { %v4327_v28 = vpop.f32.mrf.mxu1  ;;  %v4306_v36 = vadd.f32 %v4305_v27, %v4304_v25 }
 0x202   :  { %v4307_v29 = vpop.f32.mrf.mxu0  ;;  %v4328_v39 = vadd.f32 %v4327_v28, %v4326_v26 }
 0x203   :  { %v4329_v30 = vpop.f32.mrf.mxu1  ;;  %v3443_v38 = vadd.f32 %v4306_v36, %v3403_v37 }
 0x204   :  { %v4308_v31 = vpop.f32.mrf.mxu0 }
 0x205   :  { %v4330_v32 = vpop.f32.mrf.mxu1  ;;  %v3483_v43 = vadd.f32 %v4328_v39, %v3443_v38 }
 0x21e   :  { %v4348_v40 = vpop.f32.mrf.mxu0 }
 0x21f   :  { %v4370_v41 = vpop.f32.mrf.mxu1 }
 0x220   :  { %v4349_v42 = vpop.f32.mrf.mxu0 }
 0x221   :  { %v4350_v44 = vadd.f32 %v4349_v42, %v4348_v40  ;;  %v4371_v45 = vpop.f32.mrf.mxu1 }
 0x222   :  { %v4351_v46 = vpop.f32.mrf.mxu0  ;;  %v4372_v48 = vadd.f32 %v4371_v45, %v4370_v41 }
 0x223   :  { %v3523_v47 = vadd.f32 %v4350_v44, %v3483_v43  ;;  %v4373_v49 = vpop.f32.mrf.mxu1 }
 0x224   :  { %v4352_v50 = vpop.f32.mrf.mxu0 }
 0x225   :  { %v3563_v51 = vadd.f32 %v4372_v48, %v3523_v47  ;;  %v4374_v52 = vpop.f32.mrf.mxu1 }
 0x227   :  { %3568 = vst [vmem:[%s4889_s3] sm:$0xff] %v3563_v51 }
 0x228   :  { %3573 = vsyncpa [#allocation3], 1 }
 0x229   :  { %3574 = vsyncpa [#allocation5], 1 }

</bundles_post_ra>
